<compile_context>
chip_gen: v5e
topology: v5e:2x2
jax: 0.10.0
libtpu: 0.0.40
codegen_flags: <defaults>
</compile_context>

<pallas_src>
import functools
import math

import jax
import jax.numpy as jnp
from jax.experimental import pallas as pl
from jax.experimental.pallas import tpu as pltpu

KH = KW = 3
STRIDE = 3
PAD = 1
C_MID = 8          # out_channels of conv_first
BN_EPS = 1e-5


def _round_up(x, m):
    return ((x + m - 1) // m) * m


def _pick_batch_tile(n, p, f_pack, itemsize, block_budget=8 << 20):
    """Batches per grid step (TN).

    One streamed patches block costs ~ f_pack * round_up(TN*P, 128) * itemsize bytes of VMEM
    per pipeline buffer.  With the pooling matrix removed there is no quadratic VMEM term, so
    the per-block budget is ~8 MiB (<= ~24 MiB with 3 buffers: safe on v7x's 64 MiB VMEM and
    inside v6e/v5e once vmem_limit_bytes is set explicitly).  When more than one grid step is
    needed, TN is a multiple of 128 so the in-kernel pooling slices never split lanes, and we
    keep >= 2 grid steps when N allows so the batch axis can shard across v7x's two TCs.
    """
    def blk_bytes(t):
        return f_pack * _round_up(t * p, 128) * itemsize

    if n < 256 and blk_bytes(n) <= block_budget:
        return n   # single grid step: block == full array, no alignment constraint needed
    # Prefer lane-aligned TN; fall back to the minimum 128-divisibility unit only if even
    # TN=128 would blow the block budget (very large P * F configurations).
    unit = 128 if blk_bytes(128) <= block_budget else 128 // math.gcd(p, 128)
    tn = unit
    half = max(unit, (n + 1) // 2)     # keep at least 2 grid steps
    while tn + unit <= half and blk_bytes(tn + unit) <= block_budget:
        tn += unit
    return tn


def _binary_classifier_kernel(p_ref, w1_ref, shift_ref, w2_ref, b2_ref, o_ref, *,
                              spatial, tn):
    """Fused conv_first (BN scale pre-folded) -> BN shift -> ReLU -> avg-pool -> conv_final."""
    # conv_first as a single MXU matmul: (8, F) @ (F, P*TN) -> (8, P*TN), f32 accumulation.
    h = jnp.dot(w1_ref[...], p_ref[...], preferred_element_type=jnp.float32)
    # eval-mode BatchNorm shift (scale already folded into w1) + ReLU, full lane width.
    h = jnp.maximum(h + shift_ref[...], 0.0)
    # AvgPool2d over the whole Ho*Wo map: lane order inside the block is [p*TN + n], so the
    # pool is (P-1) contiguous VPU adds (lane-aligned whenever TN % 128 == 0); the 1/P mean
    # factor is folded into the conv_final weight.
    pooled = h[:, 0:tn]
    for p in range(1, spatial):
        pooled = pooled + h[:, p * tn:(p + 1) * tn]
    # conv_final (1x1, 8 -> 1): (1, 8) @ (8, TN) on the otherwise idle MXU, plus bias.
    y = jnp.dot(w2_ref[...], pooled, preferred_element_type=jnp.float32) + b2_ref[...]
    o_ref[...] = y.reshape(o_ref.shape)                                  # lane-dense (1, 1, TN)


def init_params(key, n_in_channels):
    k1, k2, k3, k4, k5, k6, k7 = jax.random.split(key, 7)
    return dict(
        w1=0.1 * jax.random.normal(k1, (C_MID, n_in_channels, KH, KW), jnp.float32),
        gamma=1.0 + 0.1 * jax.random.normal(k2, (C_MID,), jnp.float32),
        beta=0.1 * jax.random.normal(k3, (C_MID,), jnp.float32),
        running_mean=0.1 * jax.random.normal(k4, (C_MID,), jnp.float32),
        running_var=jax.random.uniform(k5, (C_MID,), jnp.float32, 0.5, 1.5),
        w2=0.1 * jax.random.normal(k6, (1, C_MID, 1, 1), jnp.float32),
        b2=0.1 * jax.random.normal(k7, (1,), jnp.float32),
    )


@functools.partial(jax.jit, static_argnames=("matmul_dtype",))
def binary_classifier_forward(x, params, matmul_dtype=jnp.bfloat16):
    """x: (N, C, H, W) float32 NCHW, like the PyTorch module.  Returns shape (N,)."""
    w1, gamma, beta = params['w1'], params['gamma'], params['beta']
    rmean, rvar = params['running_mean'], params['running_var']
    w2, b2 = params['w2'], params['b2']

    N, C, H, W = x.shape
    Ho = (H + 2 * PAD - KH) // STRIDE + 1
    Wo = (W + 2 * PAD - KW) // STRIDE + 1
    P = Ho * Wo
    F = C * KH * KW                      # no contraction-dim zero pad in HBM

    itemsize = jnp.dtype(matmul_dtype).itemsize
    f_pack = _round_up(F, 16 if itemsize == 2 else 8)   # VMEM-only sublane padding estimate
    TN = _pick_batch_tile(N, P, f_pack, itemsize)       # batches per grid step
    Np = _round_up(N, TN)
    G = Np // TN
    L = TN * P                           # lane width of one streamed patches block

    # --- glue: im2col (stride == kernel -> pure reshuffle + pad ring).  Cast to the matmul
    #     dtype *before* the reshuffle so all intermediates / the HBM patches slab are already
    #     half width on the fast path.  Layout: feature-major (c, kh, kw) x [tile, p*TN + n].
    xc = x.astype(matmul_dtype)
    xp = jnp.pad(xc, ((0, 0), (0, 0), (PAD, PAD), (PAD, PAD)))
    cols = []
    for i in range(KH):
        for j in range(KW):
            cols.append(xp[:, :, i:i + STRIDE * (Ho - 1) + 1:STRIDE,
                               j:j + STRIDE * (Wo - 1) + 1:STRIDE])
    patches = jnp.stack(cols, axis=2)                               # (N, C, KH*KW, Ho, Wo)
    patches = patches.transpose(1, 2, 0, 3, 4).reshape(F, N, P)     # feature order (c, kh, kw)
    patches = jnp.pad(patches, ((0, 0), (0, Np - N), (0, 0)))
    patches = patches.reshape(F, G, TN, P).transpose(0, 1, 3, 2).reshape(F, G * L)

    # --- glue: parameter folding (all in f32, cast afterwards -> tight-tolerance f32 path) ---
    inv_std = 1.0 / jnp.sqrt(rvar + BN_EPS)
    scale = gamma * inv_std
    w1m = (scale[:, None] * w1.reshape(C_MID, F)).astype(matmul_dtype)   # BN scale folded in
    shift = (beta - rmean * scale).reshape(C_MID, 1).astype(jnp.float32)
    w2row = (w2.reshape(1, C_MID) / float(P)).astype(jnp.float32)        # 1/P (mean) folded in
    b2m = b2.reshape(1, 1).astype(jnp.float32)

    patches_spec = pl.BlockSpec((F, L), lambda i: (0, i))
    n_buf = 2
    if G > 2:
        # Deepen pipelining on the only streamed tensor: per-step compute is far shorter than
        # its DMA once the pool matmul is gone.
        try:
            patches_spec = pl.BlockSpec((F, L), lambda i: (0, i),
                                        pipeline_mode=pl.Buffered(3))
            n_buf = 3
        except TypeError:   # older jax without pipeline_mode: keep default double buffering
            pass

    blk_vmem = f_pack * _round_up(L, 128) * itemsize
    vmem_limit = int(min(max(n_buf * blk_vmem + (4 << 20), 16 << 20), 56 << 20))

    grid_spec = pltpu.PrefetchScalarGridSpec(
        num_scalar_prefetch=0,
        grid=(G,),
        in_specs=[
            patches_spec,                                   # patches: streamed batch tiles
            pl.BlockSpec((C_MID, F), lambda i: (0, 0)),     # conv_first weight (VMEM resident)
            pl.BlockSpec((C_MID, 1), lambda i: (0, 0)),     # folded BN shift (resident)
            pl.BlockSpec((1, C_MID), lambda i: (0, 0)),     # conv_final weight / P (resident)
            pl.BlockSpec((1, 1), lambda i: (0, 0)),         # conv_final bias (resident)
        ],
        out_specs=pl.BlockSpec((1, 1, TN), lambda i: (i, 0, 0)),
    )

    out = pl.pallas_call(
        functools.partial(_binary_classifier_kernel, spatial=P, tn=TN),
        out_shape=jax.ShapeDtypeStruct((G, 1, TN), jnp.float32),
        grid_spec=grid_spec,
        compiler_params=pltpu.CompilerParams(
            dimension_semantics=("parallel",),              # batch tiles shardable on v7x's 2 TCs
            vmem_limit_bytes=vmem_limit),
    )(patches, w1m, shift, w2row, b2m)

    # == torch.squeeze(x, 3); squeeze(x, 2); squeeze(x, 1)  -> (N,)
    return out.reshape(Np)[:N]


def reference_forward(x, params):
    """Pure-JAX reference following the exact PyTorch op order (eval-mode BN)."""
    w1, gamma, beta = params['w1'], params['gamma'], params['beta']
    rmean, rvar = params['running_mean'], params['running_var']
    w2, b2 = params['w2'], params['b2']
    y = jax.lax.conv_general_dilated(
        x, w1, window_strides=(STRIDE, STRIDE), padding=((PAD, PAD), (PAD, PAD)),
        dimension_numbers=('NCHW', 'OIHW', 'NCHW'))
    y = ((y - rmean[None, :, None, None]) / jnp.sqrt(rvar + BN_EPS)[None, :, None, None]
         * gamma[None, :, None, None] + beta[None, :, None, None])
    y = jnp.maximum(y, 0.0)
    y = jnp.einsum('nchw,oc->nohw', y, w2.reshape(1, C_MID)) + b2[None, :, None, None]
    y = jnp.mean(y, axis=(2, 3))   # AvgPool2d(final_conv_dim) over the full Ho x Wo map
    return y[:, 0]


if __name__ == "__main__":
    # H=W=16 with a 3x3/stride-3/pad-1 conv gives a 6x6 feature map, i.e. this corresponds
    # to BinaryClassifier(n_in_channels=4, final_conv_dim=6).
    key = jax.random.PRNGKey(0)
    kx, kp = jax.random.split(key)
    N, C, H, W = 2, 4, 16, 16
    x = jax.random.normal(kx, (N, C, H, W), dtype=jnp.float32)
    params = init_params(kp, C)

    ref = reference_forward(x, params)

    # Exact path: f32 MXU operands, matches the fp32 PyTorch forward to tight tolerance.
    out_f32 = jax.block_until_ready(
        binary_classifier_forward(x, params, matmul_dtype=jnp.float32))
    assert out_f32.shape == (N,), out_f32.shape
    assert jnp.allclose(out_f32, ref, atol=1e-4, rtol=1e-4), (out_f32, ref)

    # Fast path (default): bf16 patches / conv weight on the MXU with f32 accumulation
    # halves HBM traffic on the dominant tensor; validated at bf16-level tolerance.
    out_bf16 = jax.block_until_ready(binary_classifier_forward(x, params))
    assert out_bf16.shape == (N,), out_bf16.shape
    assert jnp.allclose(out_bf16, ref, atol=2e-2, rtol=2e-2), (out_bf16, ref)

    print("KERNEL_OK")
</pallas_src>

<mosaic_0001>
module attributes {stable_mosaic.version = 11 : i64} {
  func.func @_binary_classifier_kernel(%arg0: i32, %arg1: memref<36x72xf32, #tpu.memory_space<vmem>>, %arg2: memref<8x36xf32, #tpu.memory_space<vmem>>, %arg3: memref<8x1xf32, #tpu.memory_space<vmem>>, %arg4: memref<1x8xf32, #tpu.memory_space<vmem>>, %arg5: memref<1x1xf32, #tpu.memory_space<vmem>>, %arg6: memref<1x1x2xf32, #tpu.memory_space<vmem>>) attributes {dimension_semantics = [#tpu.dimension_semantics<parallel>], iteration_bounds = array<i64: 1>, scalar_prefetch = 0 : i64, scratch_operands = 0 : i64, tpu.core_type = #tpu.core_type<tc>, window_params = [{transform_indices = @transform_0, window_bounds = array<i64: 36, 72>}, {pipeline_mode = #tpu.pipeline_mode<synchronous>, transform_indices = @transform_1, window_bounds = array<i64: 8, 36>}, {pipeline_mode = #tpu.pipeline_mode<synchronous>, transform_indices = @transform_2, window_bounds = array<i64: 8, 1>}, {pipeline_mode = #tpu.pipeline_mode<synchronous>, transform_indices = @transform_3, window_bounds = array<i64: 1, 8>}, {pipeline_mode = #tpu.pipeline_mode<synchronous>, transform_indices = @transform_4, window_bounds = array<i64: 1, 1>}, {transform_indices = @transform_5, window_bounds = array<i64: 1, 1, 2>}]} {
    %c0 = arith.constant 0 : index
    %c0_0 = arith.constant 0 : index
    %0 = vector.load %arg2[%c0, %c0_0] : memref<8x36xf32, #tpu.memory_space<vmem>>, vector<8x36xf32>
    %c0_1 = arith.constant 0 : index
    %c0_2 = arith.constant 0 : index
    %1 = vector.load %arg1[%c0_1, %c0_2] : memref<36x72xf32, #tpu.memory_space<vmem>>, vector<36x72xf32>
    %cst = arith.constant dense<0.000000e+00> : vector<8x72xf32>
    %2 = tpu.matmul %0, %1, %cst {dimension_numbers = #tpu.dot_dimension_numbers<[1], [0], [0], [1], [0, 0, 1, 1], [], []>} : vector<8x36xf32>, vector<36x72xf32>, vector<8x72xf32> -> vector<8x72xf32>
    %c0_3 = arith.constant 0 : index
    %c0_4 = arith.constant 0 : index
    %3 = vector.load %arg3[%c0_3, %c0_4] : memref<8x1xf32, #tpu.memory_space<vmem>>, vector<8x1xf32>
    %4 = vector.broadcast %3 : vector<8x1xf32> to vector<8x72xf32>
    %5 = arith.addf %2, %4 : vector<8x72xf32>
    %cst_5 = arith.constant 0.000000e+00 : f32
    %6 = vector.broadcast %cst_5 : f32 to vector<8x72xf32>
    %7 = arith.maximumf %5, %6 : vector<8x72xf32>
    %8 = vector.extract_strided_slice %7 {offsets = [0, 0], sizes = [8, 2], strides = [1, 1]} : vector<8x72xf32> to vector<8x2xf32>
    %9 = vector.extract_strided_slice %7 {offsets = [0, 2], sizes = [8, 2], strides = [1, 1]} : vector<8x72xf32> to vector<8x2xf32>
    %10 = arith.addf %8, %9 : vector<8x2xf32>
    %11 = vector.extract_strided_slice %7 {offsets = [0, 4], sizes = [8, 2], strides = [1, 1]} : vector<8x72xf32> to vector<8x2xf32>
    %12 = arith.addf %10, %11 : vector<8x2xf32>
    %13 = vector.extract_strided_slice %7 {offsets = [0, 6], sizes = [8, 2], strides = [1, 1]} : vector<8x72xf32> to vector<8x2xf32>
    %14 = arith.addf %12, %13 : vector<8x2xf32>
    %15 = vector.extract_strided_slice %7 {offsets = [0, 8], sizes = [8, 2], strides = [1, 1]} : vector<8x72xf32> to vector<8x2xf32>
    %16 = arith.addf %14, %15 : vector<8x2xf32>
    %17 = vector.extract_strided_slice %7 {offsets = [0, 10], sizes = [8, 2], strides = [1, 1]} : vector<8x72xf32> to vector<8x2xf32>
    %18 = arith.addf %16, %17 : vector<8x2xf32>
    %19 = vector.extract_strided_slice %7 {offsets = [0, 12], sizes = [8, 2], strides = [1, 1]} : vector<8x72xf32> to vector<8x2xf32>
    %20 = arith.addf %18, %19 : vector<8x2xf32>
    %21 = vector.extract_strided_slice %7 {offsets = [0, 14], sizes = [8, 2], strides = [1, 1]} : vector<8x72xf32> to vector<8x2xf32>
    %22 = arith.addf %20, %21 : vector<8x2xf32>
    %23 = vector.extract_strided_slice %7 {offsets = [0, 16], sizes = [8, 2], strides = [1, 1]} : vector<8x72xf32> to vector<8x2xf32>
    %24 = arith.addf %22, %23 : vector<8x2xf32>
    %25 = vector.extract_strided_slice %7 {offsets = [0, 18], sizes = [8, 2], strides = [1, 1]} : vector<8x72xf32> to vector<8x2xf32>
    %26 = arith.addf %24, %25 : vector<8x2xf32>
    %27 = vector.extract_strided_slice %7 {offsets = [0, 20], sizes = [8, 2], strides = [1, 1]} : vector<8x72xf32> to vector<8x2xf32>
    %28 = arith.addf %26, %27 : vector<8x2xf32>
    %29 = vector.extract_strided_slice %7 {offsets = [0, 22], sizes = [8, 2], strides = [1, 1]} : vector<8x72xf32> to vector<8x2xf32>
    %30 = arith.addf %28, %29 : vector<8x2xf32>
    %31 = vector.extract_strided_slice %7 {offsets = [0, 24], sizes = [8, 2], strides = [1, 1]} : vector<8x72xf32> to vector<8x2xf32>
    %32 = arith.addf %30, %31 : vector<8x2xf32>
    %33 = vector.extract_strided_slice %7 {offsets = [0, 26], sizes = [8, 2], strides = [1, 1]} : vector<8x72xf32> to vector<8x2xf32>
    %34 = arith.addf %32, %33 : vector<8x2xf32>
    %35 = vector.extract_strided_slice %7 {offsets = [0, 28], sizes = [8, 2], strides = [1, 1]} : vector<8x72xf32> to vector<8x2xf32>
    %36 = arith.addf %34, %35 : vector<8x2xf32>
    %37 = vector.extract_strided_slice %7 {offsets = [0, 30], sizes = [8, 2], strides = [1, 1]} : vector<8x72xf32> to vector<8x2xf32>
    %38 = arith.addf %36, %37 : vector<8x2xf32>
    %39 = vector.extract_strided_slice %7 {offsets = [0, 32], sizes = [8, 2], strides = [1, 1]} : vector<8x72xf32> to vector<8x2xf32>
    %40 = arith.addf %38, %39 : vector<8x2xf32>
    %41 = vector.extract_strided_slice %7 {offsets = [0, 34], sizes = [8, 2], strides = [1, 1]} : vector<8x72xf32> to vector<8x2xf32>
    %42 = arith.addf %40, %41 : vector<8x2xf32>
    %43 = vector.extract_strided_slice %7 {offsets = [0, 36], sizes = [8, 2], strides = [1, 1]} : vector<8x72xf32> to vector<8x2xf32>
    %44 = arith.addf %42, %43 : vector<8x2xf32>
    %45 = vector.extract_strided_slice %7 {offsets = [0, 38], sizes = [8, 2], strides = [1, 1]} : vector<8x72xf32> to vector<8x2xf32>
    %46 = arith.addf %44, %45 : vector<8x2xf32>
    %47 = vector.extract_strided_slice %7 {offsets = [0, 40], sizes = [8, 2], strides = [1, 1]} : vector<8x72xf32> to vector<8x2xf32>
    %48 = arith.addf %46, %47 : vector<8x2xf32>
    %49 = vector.extract_strided_slice %7 {offsets = [0, 42], sizes = [8, 2], strides = [1, 1]} : vector<8x72xf32> to vector<8x2xf32>
    %50 = arith.addf %48, %49 : vector<8x2xf32>
    %51 = vector.extract_strided_slice %7 {offsets = [0, 44], sizes = [8, 2], strides = [1, 1]} : vector<8x72xf32> to vector<8x2xf32>
    %52 = arith.addf %50, %51 : vector<8x2xf32>
    %53 = vector.extract_strided_slice %7 {offsets = [0, 46], sizes = [8, 2], strides = [1, 1]} : vector<8x72xf32> to vector<8x2xf32>
    %54 = arith.addf %52, %53 : vector<8x2xf32>
    %55 = vector.extract_strided_slice %7 {offsets = [0, 48], sizes = [8, 2], strides = [1, 1]} : vector<8x72xf32> to vector<8x2xf32>
    %56 = arith.addf %54, %55 : vector<8x2xf32>
    %57 = vector.extract_strided_slice %7 {offsets = [0, 50], sizes = [8, 2], strides = [1, 1]} : vector<8x72xf32> to vector<8x2xf32>
    %58 = arith.addf %56, %57 : vector<8x2xf32>
    %59 = vector.extract_strided_slice %7 {offsets = [0, 52], sizes = [8, 2], strides = [1, 1]} : vector<8x72xf32> to vector<8x2xf32>
    %60 = arith.addf %58, %59 : vector<8x2xf32>
    %61 = vector.extract_strided_slice %7 {offsets = [0, 54], sizes = [8, 2], strides = [1, 1]} : vector<8x72xf32> to vector<8x2xf32>
    %62 = arith.addf %60, %61 : vector<8x2xf32>
    %63 = vector.extract_strided_slice %7 {offsets = [0, 56], sizes = [8, 2], strides = [1, 1]} : vector<8x72xf32> to vector<8x2xf32>
    %64 = arith.addf %62, %63 : vector<8x2xf32>
    %65 = vector.extract_strided_slice %7 {offsets = [0, 58], sizes = [8, 2], strides = [1, 1]} : vector<8x72xf32> to vector<8x2xf32>
    %66 = arith.addf %64, %65 : vector<8x2xf32>
    %67 = vector.extract_strided_slice %7 {offsets = [0, 60], sizes = [8, 2], strides = [1, 1]} : vector<8x72xf32> to vector<8x2xf32>
    %68 = arith.addf %66, %67 : vector<8x2xf32>
    %69 = vector.extract_strided_slice %7 {offsets = [0, 62], sizes = [8, 2], strides = [1, 1]} : vector<8x72xf32> to vector<8x2xf32>
    %70 = arith.addf %68, %69 : vector<8x2xf32>
    %71 = vector.extract_strided_slice %7 {offsets = [0, 64], sizes = [8, 2], strides = [1, 1]} : vector<8x72xf32> to vector<8x2xf32>
    %72 = arith.addf %70, %71 : vector<8x2xf32>
    %73 = vector.extract_strided_slice %7 {offsets = [0, 66], sizes = [8, 2], strides = [1, 1]} : vector<8x72xf32> to vector<8x2xf32>
    %74 = arith.addf %72, %73 : vector<8x2xf32>
    %75 = vector.extract_strided_slice %7 {offsets = [0, 68], sizes = [8, 2], strides = [1, 1]} : vector<8x72xf32> to vector<8x2xf32>
    %76 = arith.addf %74, %75 : vector<8x2xf32>
    %77 = vector.extract_strided_slice %7 {offsets = [0, 70], sizes = [8, 2], strides = [1, 1]} : vector<8x72xf32> to vector<8x2xf32>
    %78 = arith.addf %76, %77 : vector<8x2xf32>
    %c0_6 = arith.constant 0 : index
    %c0_7 = arith.constant 0 : index
    %79 = vector.load %arg4[%c0_6, %c0_7] : memref<1x8xf32, #tpu.memory_space<vmem>>, vector<1x8xf32>
    %cst_8 = arith.constant dense<0.000000e+00> : vector<1x2xf32>
    %80 = tpu.matmul %79, %78, %cst_8 {dimension_numbers = #tpu.dot_dimension_numbers<[1], [0], [0], [1], [0, 0, 1, 1], [], []>} : vector<1x8xf32>, vector<8x2xf32>, vector<1x2xf32> -> vector<1x2xf32>
    %c0_9 = arith.constant 0 : index
    %c0_10 = arith.constant 0 : index
    %81 = vector.load %arg5[%c0_9, %c0_10] : memref<1x1xf32, #tpu.memory_space<vmem>>, vector<1x1xf32>
    %82 = vector.broadcast %81 : vector<1x1xf32> to vector<1x2xf32>
    %83 = arith.addf %80, %82 : vector<1x2xf32>
    %84 = vector.shape_cast %83 : vector<1x2xf32> to vector<1x1x2xf32>
    %c0_11 = arith.constant 0 : index
    %c0_12 = arith.constant 0 : index
    %c0_13 = arith.constant 0 : index
    %85 = vector.load %arg6[%c0_11, %c0_12, %c0_13] : memref<1x1x2xf32, #tpu.memory_space<vmem>>, vector<1x1x2xf32>
    tpu.vector_store %arg6[%c0_11, %c0_12, %c0_13], %84 {strides = array<i32>} : memref<1x1x2xf32, #tpu.memory_space<vmem>>, vector<1x1x2xf32>,
    return
  }
  func.func @transform_0(%arg0: i32) -> (i32, i32) {
    %c0_i32 = arith.constant 0 : i32
    %c0_i32_0 = arith.constant 0 : i32
    return %c0_i32, %arg0 : i32, i32
  }
  func.func @transform_1(%arg0: i32) -> (i32, i32) {
    %c0_i32 = arith.constant 0 : i32
    %c0_i32_0 = arith.constant 0 : i32
    %c0_i32_1 = arith.constant 0 : i32
    return %c0_i32, %c0_i32_0 : i32, i32
  }
  func.func @transform_2(%arg0: i32) -> (i32, i32) {
    %c0_i32 = arith.constant 0 : i32
    %c0_i32_0 = arith.constant 0 : i32
    %c0_i32_1 = arith.constant 0 : i32
    return %c0_i32, %c0_i32_0 : i32, i32
  }
  func.func @transform_3(%arg0: i32) -> (i32, i32) {
    %c0_i32 = arith.constant 0 : i32
    %c0_i32_0 = arith.constant 0 : i32
    %c0_i32_1 = arith.constant 0 : i32
    return %c0_i32, %c0_i32_0 : i32, i32
  }
  func.func @transform_4(%arg0: i32) -> (i32, i32) {
    %c0_i32 = arith.constant 0 : i32
    %c0_i32_0 = arith.constant 0 : i32
    %c0_i32_1 = arith.constant 0 : i32
    return %c0_i32, %c0_i32_0 : i32, i32
  }
  func.func @transform_5(%arg0: i32) -> (i32, i32, i32) {
    %c0_i32 = arith.constant 0 : i32
    %c0_i32_0 = arith.constant 0 : i32
    %c0_i32_1 = arith.constant 0 : i32
    return %arg0, %c0_i32, %c0_i32_0 : i32, i32, i32
  }
}

</mosaic_0001>

<bundles_post_ra>
// kernel: binary_classifier_forward.1
= control target key start
LH: loop header
LB: loop body
LE: loop exit
PB: predicated region body
PF: predicated region fallthrough
CT: control target
= control target key end

     0   :  { %s457_s0 = inlined_call_operand.vmem [shape: f32[36,72], index: 0, kind: input, shape index: {}]   ;;  %s458_s1 = inlined_call_operand.vmem [shape: f32[8,36], index: 1, kind: input, shape index: {}]   ;;  %s459_s2 = inlined_call_operand.vmem [shape: f32[8,1], index: 2, kind: input, shape index: {}]   ;;  %s460_s3 = inlined_call_operand.vmem [shape: f32[1,8], index: 3, kind: input, shape index: {}]   ;;  %s461_s4 = inlined_call_operand.<no memory space> [shape: f32[1,1], index: 4, kind: input, shape index: {}]   ;;  %s462_s5 = inlined_call_operand.hbm [shape: f32[1,1,2], index: 5, kind: output, shape index: {}]  }
   0x1   :  { %v10_v0 = vstv %s461_s4 }
   0x2   :  { %11 = vst [vmem:[#allocation2] sm:$0x1] %v10_v0 }
   0x3   :  { %v28_v1 = vld [vmem:[%s457_s0 + $0x20] sm:$0xf]  ;;  %vm39_vm0 = vcmask 1043456   ;;  %v27_v2 = vld [vmem:[%s457_s0 + $0x18] sm:$0xff]  ;;  %v26_v3 = vld [vmem:[%s457_s0 + $0x10] sm:$0xff]  ;;  %v322_v4 = vmov 0  }
   0x4   :  { %255 = vmatpush.msk.msra.mxu0 %vm39_vm0, %v28_v1  ;;  %295 = vset.pattern.permute.xlu0 %v322_v4  ;;  %v29_v5 = vld [vmem:[%s459_s2] sm:$0xff] }
   0x5   :  { %12 = vsyncpa [#allocation4], 0  ;;  %32 = vperm.xlu0 %295, %v29_v5   ;;  %v25_v6 = vld [vmem:[%s457_s0 + $0x8] sm:$0xff]  ;;  %v24_v7 = vld [vmem:[%s457_s0] sm:$0xff]  ;;  %vm35_vm1 = vcmask 293888   ;;  %s323_s2 = smov 120  }
   0x6   :  { %55 = vmatpush.msra.mxu0 %v27_v2  ;;  %v23_v8 = vld [vmem:[%s458_s1] sm:$0xff]  ;;  %s324_s8 = smov 124   ;;  %s325_s0 = smov 126   ;;  %vm213_vm2 = vcmask 64512   ;;  %vm237_vm3 = vcmask 8192  }
   0x7   :  { %s326_s9 = smov 118   ;;  %s327_s1 = smov 122  }
   0x8   :  { %56 = vmatpush.msra.mxu0 %v26_v3  ;;  %s328_s10 = smov 116   ;;  %s329_s11 = smov 112  }
   0x9   :  { %s330_s12 = smov 114   ;;  %s331_s13 = smov 110   ;;  %v206_v13 = vld [vmem:[#allocation2] sm:$0x1] }
   0xa   :  { %57 = vmatpush.msra.mxu0 %v25_v6  ;;  %s332_s14 = smov 106   ;;  %s333_s15 = smov 108  }
   0xb   :  { %s334_s16 = smov 104   ;;  %s335_s17 = smov 100  }
   0xc   :  { %58 = vmatpush.msra.mxu0 %v24_v7  ;;  %s336_s18 = smov 102   ;;  %s337_s19 = smov 98  }
   0xd   :  { %256 = vmatmul.msk.f32.vlgmr.msra.gmra.mxu0 %vm35_vm1, %v23_v8  ;;  %s338_s20 = smov 94   ;;  %s339_s21 = smov 96  }
   0xe   :  { %s340_s22 = smov 92   ;;  %s341_s23 = smov 88  }
   0xf   :  { %s342_s24 = smov 90   ;;  %s343_s25 = smov 86  }
  0x10   :  { %s344_s26 = smov 82   ;;  %s345_s27 = smov 84  }
  0x11   :  { %s346_s4 = smov 80   ;;  %s347_s28 = smov 76  }
  0x12   :  { %s348_s29 = smov 78   ;;  %s349_s30 = smov 74  }
  0x13   :  { %s350_s6 = smov 70   ;;  %s351_s7 = smov 72  }
  0x77   :  { %v33_v9 = vpop.permute.xlu0 %32 }
  0x8a   :  { %v60_v10 = vpop.f32.mrf.mxu0 }
  0x8b   :  { %v61_v11 = vadd.f32 %v60_v10, %v33_v9 }
  0x8d   :  { %v413_v12 = vmax.f32 %v61_v11, 0.0 }
  0x8f   :  { %77 = vrot.lane.b32.xlu2 %v413_v12, %s323_s2  ;;  %69 = vrot.lane.b32.xlu1 %v413_v12, %s324_s8  ;;  %s352_s2 = smov 68   ;;  %s353_s8 = smov 64  }
  0x90   :  { %65 = vrot.lane.b32.xlu0 %v413_v12, %s325_s0  ;;  %s354_s0 = smov 66  }
  0x97   :  { %81 = vrot.lane.b32.xlu2 %v413_v12, %s326_s9  ;;  %73 = vrot.lane.b32.xlu1 %v413_v12, %s327_s1  ;;  %s355_s9 = smov 62   ;;  %s356_s1 = smov 58  }
  0x98   :  { %85 = vrot.lane.b32.xlu0 %v413_v12, %s328_s10  ;;  %s357_s10 = smov 60  }
  0x9f   :  { %93 = vrot.lane.b32.xlu2 %v413_v12, %s329_s11  ;;  %89 = vrot.lane.b32.xlu1 %v413_v12, %s330_s12 }
  0xa0   :  { %97 = vrot.lane.b32.xlu0 %v413_v12, %s331_s13  ;;  %s358_s13 = smov [#allocation3]  }
  0xa7   :  { %105 = vrot.lane.b32.xlu2 %v413_v12, %s332_s14  ;;  %101 = vrot.lane.b32.xlu1 %v413_v12, %s333_s15  ;;  %s244_s14 = sshll.u32 %s358_s13, 4  ;;  %s245_s14 = int_to_ptr.vmem [resolvable:$true] %s244_s14 }
  0xa8   :  { %109 = vrot.lane.b32.xlu0 %v413_v12, %s334_s16 }
  0xaf   :  { %117 = vrot.lane.b32.xlu2 %v413_v12, %s335_s17  ;;  %113 = vrot.lane.b32.xlu1 %v413_v12, %s336_s18  ;;  %s246_s17 = sshll.u32 %s462_s5, 4  ;;  %s247_s17 = int_to_ptr.hbm [resolvable:$true] %s246_s17 }
  0xb0   :  { %121 = vrot.lane.b32.xlu0 %v413_v12, %s337_s19 }
  0xb7   :  { %129 = vrot.lane.b32.xlu2 %v413_v12, %s338_s20  ;;  %125 = vrot.lane.b32.xlu1 %v413_v12, %s339_s21 }
  0xb8   :  { %133 = vrot.lane.b32.xlu0 %v413_v12, %s340_s22 }
  0xbf   :  { %141 = vrot.lane.b32.xlu2 %v413_v12, %s341_s23  ;;  %137 = vrot.lane.b32.xlu1 %v413_v12, %s342_s24 }
  0xc0   :  { %145 = vrot.lane.b32.xlu0 %v413_v12, %s343_s25 }
  0xc7   :  { %153 = vrot.lane.b32.xlu2 %v413_v12, %s344_s26  ;;  %149 = vrot.lane.b32.xlu1 %v413_v12, %s345_s27 }
  0xc8   :  { %157 = vrot.lane.b32.xlu0 %v413_v12, %s346_s4 }
  0xcf   :  { %165 = vrot.lane.b32.xlu2 %v413_v12, %s347_s28  ;;  %161 = vrot.lane.b32.xlu1 %v413_v12, %s348_s29 }
  0xd0   :  { %169 = vrot.lane.b32.xlu0 %v413_v12, %s349_s30 }
  0xd7   :  { %177 = vrot.lane.b32.xlu2 %v413_v12, %s350_s6  ;;  %173 = vrot.lane.b32.xlu1 %v413_v12, %s351_s7 }
  0xd8   :  { %181 = vrot.lane.b32.xlu0 %v413_v12, %s352_s2 }
  0xdf   :  { %189 = vrot.lane.b32.xlu2 %v413_v12, %s353_s8  ;;  %185 = vrot.lane.b32.xlu1 %v413_v12, %s354_s0 }
  0xe0   :  { %193 = vrot.lane.b32.xlu0 %v413_v12, %s355_s9 }
  0xe7   :  { %201 = vrot.lane.b32.xlu2 %v413_v12, %s356_s1  ;;  %197 = vrot.lane.b32.xlu1 %v413_v12, %s357_s10 }
  0xe8   :  { %209 = vperm.xlu0 %295, %v206_v13  }
  0xe9   :  { %v78_v14 = vpop.permute.xlu2 %77 }
  0xf1   :  { %v82_v15 = vpop.permute.xlu2 %81 }
  0xf9   :  { %v94_v16 = vpop.permute.xlu2 %93 }
 0x101   :  { %v70_v17 = vpop.permute.xlu1 %69  ;;  %v106_v24 = vpop.permute.xlu2 %105 }
 0x102   :  { %v66_v18 = vpop.permute.xlu0 %65 }
 0x103   :  { %v68_v19 = vadd.f32 %v66_v18, %v413_v12 }
 0x105   :  { %v72_v20 = vadd.f32 %v70_v17, %v68_v19 }
 0x109   :  { %v74_v21 = vpop.permute.xlu1 %73  ;;  %v118_v32 = vpop.permute.xlu2 %117 }
 0x10a   :  { %v76_v22 = vadd.f32 %v74_v21, %v72_v20  ;;  %v86_v23 = vpop.permute.xlu0 %85  ;;  %v205_v20 = vld [vmem:[%s460_s3] sm:$0x1] }
 0x10c   :  { %v80_v25 = vadd.f32 %v78_v14, %v76_v22 }
 0x10e   :  { %v84_v26 = vadd.f32 %v82_v15, %v80_v25 }
 0x110   :  { %v88_v27 = vadd.f32 %v86_v23, %v84_v26 }
 0x111   :  { %v90_v28 = vpop.permute.xlu1 %89  ;;  %v130_v38 = vpop.permute.xlu2 %129 }
 0x112   :  { %v92_v29 = vadd.f32 %v90_v28, %v88_v27  ;;  %v98_v30 = vpop.permute.xlu0 %97 }
 0x114   :  { %v96_v31 = vadd.f32 %v94_v16, %v92_v29 }
 0x116   :  { %v100_v33 = vadd.f32 %v98_v30, %v96_v31 }
 0x119   :  { %v102_v34 = vpop.permute.xlu1 %101  ;;  %v142_v45 = vpop.permute.xlu2 %141 }
 0x11a   :  { %v104_v35 = vadd.f32 %v102_v34, %v100_v33  ;;  %v110_v36 = vpop.permute.xlu0 %109 }
 0x11c   :  { %v108_v37 = vadd.f32 %v106_v24, %v104_v35 }
 0x11e   :  { %v112_v39 = vadd.f32 %v110_v36, %v108_v37 }
 0x121   :  { %v114_v40 = vpop.permute.xlu1 %113  ;;  %v154_v54 = vpop.permute.xlu2 %153 }
 0x122   :  { %v116_v41 = vadd.f32 %v114_v40, %v112_v39  ;;  %v122_v42 = vpop.permute.xlu0 %121 }
 0x124   :  { %v120_v43 = vadd.f32 %v118_v32, %v116_v41 }
 0x126   :  { %v124_v44 = vadd.f32 %v122_v42, %v120_v43 }
 0x129   :  { %v126_v46 = vpop.permute.xlu1 %125  ;;  %v166_v61 = vpop.permute.xlu2 %165 }
 0x12a   :  { %v128_v47 = vadd.f32 %v126_v46, %v124_v44  ;;  %v134_v48 = vpop.permute.xlu0 %133 }
 0x12c   :  { %v132_v49 = vadd.f32 %v130_v38, %v128_v47 }
 0x12e   :  { %v136_v50 = vadd.f32 %v134_v48, %v132_v49 }
 0x131   :  { %v138_v51 = vpop.permute.xlu1 %137  ;;  %v178_v3 = vpop.permute.xlu2 %177 }
 0x132   :  { %v140_v52 = vadd.f32 %v138_v51, %v136_v50  ;;  %v146_v53 = vpop.permute.xlu0 %145 }
 0x134   :  { %v144_v55 = vadd.f32 %v142_v45, %v140_v52 }
 0x136   :  { %v148_v56 = vadd.f32 %v146_v53, %v144_v55 }
 0x139   :  { %v150_v57 = vpop.permute.xlu1 %149  ;;  %v190_v10 = vpop.permute.xlu2 %189 }
 0x13a   :  { %v152_v58 = vadd.f32 %v150_v57, %v148_v56  ;;  %v158_v59 = vpop.permute.xlu0 %157 }
 0x13c   :  { %v156_v60 = vadd.f32 %v154_v54, %v152_v58 }
 0x13e   :  { %v160_v62 = vadd.f32 %v158_v59, %v156_v60 }
 0x141   :  { %v162_v63 = vpop.permute.xlu1 %161  ;;  %v202_v18 = vpop.permute.xlu2 %201 }
 0x142   :  { %v164_v0 = vadd.f32 %v162_v63, %v160_v62  ;;  %v170_v1 = vpop.permute.xlu0 %169 }
 0x144   :  { %v168_v2 = vadd.f32 %v166_v61, %v164_v0 }
 0x146   :  { %v172_v4 = vadd.f32 %v170_v1, %v168_v2 }
 0x149   :  { %v174_v5 = vpop.permute.xlu1 %173 }
 0x14a   :  { %v176_v6 = vadd.f32 %v174_v5, %v172_v4  ;;  %v182_v8 = vpop.permute.xlu0 %181 }
 0x14c   :  { %v180_v7 = vadd.f32 %v178_v3, %v176_v6 }
 0x14e   :  { %v184_v9 = vadd.f32 %v182_v8, %v180_v7 }
 0x151   :  { %v186_v11 = vpop.permute.xlu1 %185 }
 0x152   :  { %v188_v12 = vadd.f32 %v186_v11, %v184_v9  ;;  %v194_v14 = vpop.permute.xlu0 %193 }
 0x154   :  { %v192_v13 = vadd.f32 %v190_v10, %v188_v12 }
 0x156   :  { %v196_v15 = vadd.f32 %v194_v14, %v192_v13 }
 0x159   :  { %v198_v16 = vpop.permute.xlu1 %197 }
 0x15a   :  { %v200_v17 = vadd.f32 %v198_v16, %v196_v15  ;;  %v210_v21 = vpop.permute.xlu0 %209 }
 0x15b   :  { %v212_v22 = vperm.slane %v210_v21, 0 }
 0x15c   :  { %v204_v19 = vadd.f32 %v202_v18, %v200_v17 }
 0x15e   :  { %232 = vmatpush.msra.mxu1 %v204_v19 }
 0x15f   :  { %257 = vmatmul.msk.f32.vlgmr.msra.gmra.mxu1 %vm213_vm2, %v205_v20 }
 0x1dc   :  { %v234_v23 = vpop.f32.mrf.mxu1 }
 0x1dd   :  { %v235_v24 = vadd.f32 %v234_v23, %v212_v22 }
 0x1df   :  { %238 = vst.msk [vmem:[#allocation3] sm:$0x1] %vm237_vm3, %v235_v24 }
 0x1e0   :  { %249 = dma.vmem_to_hbm [thread:$0]  %s245_s14, 16, %s247_s17, [#allocation4]  }
 0x1e1   :  { %320 = dma.done.wait [#allocation4], 16  }
 0x1e2   :  { %321 = vsyncadd [#allocation4], 4294967280 }
 0x1e3   :  { %254 = vsyncpa [#allocation4], 1 }

</bundles_post_ra>
